<compile_context>
chip_gen: v6e
topology: v6e:2x2x1
jax: 0.10.0
libtpu: 0.0.40
codegen_flags: <defaults>
</compile_context>

<pallas_src>
import functools

import jax
import jax.numpy as jnp
from jax import lax
from jax.experimental import pallas as pl
from jax.experimental.pallas import tpu as pltpu


def _sigmoid_epilogue(z_row, z_col, adj_ref, mxu_dtype):
    """logits = z_row @ z_col.T (contract on the lane axis); adj = sigmoid(logits)."""
    if mxu_dtype is not None:
        z_row = z_row.astype(mxu_dtype)
        z_col = z_col.astype(mxu_dtype)
    # Contract both operands on their last (lane) axis -> (TM, TN) on the MXU;
    # no in-kernel transpose / XLU relayout of the column tile.
    logits = lax.dot_general(
        z_row, z_col,
        dimension_numbers=(((1,), (1,)), ((), ())),
        preferred_element_type=jnp.float32,
        precision=lax.Precision.HIGHEST,
    )
    if adj_ref.dtype == jnp.bfloat16:
        # bf16 EUP path (v6e/v7x): keeps the single EUP slot off the critical
        # path once writeback is halved by the bf16 output.
        logits = logits.astype(jnp.bfloat16)
    # sigmoid(x) = 0.5 * (tanh(x/2) + 1): one EUP transcendental per element.
    adj = 0.5 * (jnp.tanh(0.5 * logits) + 1.0)
    adj_ref[...] = adj.astype(adj_ref.dtype)


def _ipd_resident_kernel(z_ref, adj_ref, *, tile, mxu_dtype):
    # z is fully VMEM-resident (constant block index -> single DMA); slice the
    # row / column chunks of the (i, j) output tile in-kernel.
    i = pl.program_id(0)
    j = pl.program_id(1)
    z_row = z_ref[pl.ds(pl.multiple_of(i * tile, tile), tile), :]
    z_col = z_ref[pl.ds(pl.multiple_of(j * tile, tile), tile), :]
    _sigmoid_epilogue(z_row, z_col, adj_ref, mxu_dtype)


def _ipd_streamed_kernel(z_row_ref, z_col_ref, adj_ref, *, mxu_dtype):
    _sigmoid_epilogue(z_row_ref[...], z_col_ref[...], adj_ref, mxu_dtype)


_RESIDENT_BUDGET_BYTES = 16 * 1024 * 1024  # keep z fully VMEM-resident below this


def inner_product_decoder(z, *, dropout=0.0, training=False, seed=0, tile=None,
                          out_dtype=None, mxu_dtype=None, resident=None):
    """Pallas equivalent of InnerProductDecoder(dropout, act=sigmoid).forward(z)."""
    n, d = z.shape
    out_dtype = jnp.dtype(z.dtype if out_dtype is None else out_dtype)
    in_bytes = jnp.dtype(z.dtype).itemsize
    out_bytes = out_dtype.itemsize

    # --- dropout: one tiny N*D masking pass, hoisted out of the tile loop ----
    dropout = float(dropout)
    if training and dropout > 0.0:
        if dropout >= 1.0:
            z = jnp.zeros_like(z)            # F.dropout(p=1): everything dropped
        else:
            keep = jax.random.bernoulli(jax.random.PRNGKey(seed),
                                        1.0 - dropout, z.shape)
            z = jnp.where(keep, z * (1.0 / (1.0 - dropout)),
                          jnp.zeros_like(z)).astype(z.dtype)

    # --- tile selection: lane-dense, large enough to amortize per-step cost ---
    if tile is None:
        max_t = 2048 if out_bytes <= 2 else 1024   # keep 2x double-buffered out small
        tile = n if n <= max_t else max_t
    t = int(min(tile, n))
    if t < n and t % 128 != 0:
        raise ValueError("tile must be a multiple of 128 (or >= n)")

    grid = (pl.cdiv(n, t), pl.cdiv(n, t))
    n_pad = t * pl.cdiv(n, t)
    if resident is None:
        resident = (n_pad * d * in_bytes) <= _RESIDENT_BUDGET_BYTES

    out_block = pl.BlockSpec((t, t), lambda i, j: (i, j))

    if resident:
        # Pad rows to a tile multiple so the in-kernel pl.ds slices never run OOB.
        z_in = z if n_pad == n else jnp.pad(z, ((0, n_pad - n), (0, 0)))
        kernel = functools.partial(_ipd_resident_kernel, tile=t, mxu_dtype=mxu_dtype)
        in_specs = [pl.BlockSpec((n_pad, d), lambda i, j: (0, 0))]  # DMA'd once
        operands = (z_in,)
        out_shape = jax.ShapeDtypeStruct((n_pad, n_pad), out_dtype)
        vmem_need = 2 * n_pad * d * in_bytes + 2 * t * t * out_bytes
    else:
        kernel = functools.partial(_ipd_streamed_kernel, mxu_dtype=mxu_dtype)
        in_specs = [pl.BlockSpec((t, d), lambda i, j: (i, 0)),   # row operand
                    pl.BlockSpec((t, d), lambda i, j: (j, 0))]   # column operand
        operands = (z, z)
        out_shape = jax.ShapeDtypeStruct((n, n), out_dtype)
        vmem_need = 4 * t * d * in_bytes + 2 * t * t * out_bytes

    # Scoped VMEM derived from the actual tile; capped at v7x's 64 MiB physical.
    vmem_limit = min(64 * 1024 * 1024,
                     max(32 * 1024 * 1024, int(vmem_need * 1.25) + (2 << 20)))

    adj = pl.pallas_call(
        kernel,
        out_shape=out_shape,
        grid=grid,
        in_specs=in_specs,
        out_specs=out_block,
        compiler_params=pltpu.CompilerParams(
            # Independent output axes; on v7x the (i, j) tiles split across the
            # two TensorCores.  TODO(synk): if xprof shows one TC idle on v7x,
            # switch the outer axis to pltpu.CORE_PARALLEL.
            dimension_semantics=("parallel", "parallel"),
            vmem_limit_bytes=vmem_limit,
        ),
    )(*operands)

    if resident and n_pad != n:
        adj = adj[:n, :n]
    return adj


if __name__ == "__main__":
    key = jax.random.PRNGKey(0)
    N, D = 256, 32  # N graph nodes, D-dim latent embedding (module has no weights)
    z = jax.random.normal(key, (N, D), dtype=jnp.float32)
    ref = jax.nn.sigmoid(jnp.dot(z, z.T, precision=jax.lax.Precision.HIGHEST))

    # Eval mode (training=False): dropout is the identity.  tile=128 exercises
    # the 2x2 grid on the VMEM-resident path.
    adj = inner_product_decoder(z, dropout=0.5, training=False, seed=0, tile=128)
    adj = jax.block_until_ready(adj)
    assert adj.shape == (N, N)
    assert jnp.allclose(adj, ref, atol=1e-5), "eval-mode result differs from reference"

    # Non-divisible N exercises edge/padded tiles on both paths; resident=False
    # forces the streamed two-operand fallback.
    z2 = jax.random.normal(jax.random.PRNGKey(1), (200, D), dtype=jnp.float32)
    ref2 = jax.nn.sigmoid(jnp.dot(z2, z2.T, precision=jax.lax.Precision.HIGHEST))
    for res in (True, False):
        adj2 = jax.block_until_ready(
            inner_product_decoder(z2, dropout=0.0, training=False, tile=128,
                                  resident=res))
        assert adj2.shape == (200, 200)
        assert jnp.allclose(adj2, ref2, atol=1e-5), f"resident={res} path differs"

    # Training mode: dropout active (applied once, outside the tile loop) -> the
    # adjacency equals sigmoid(dropout(z) @ dropout(z).T) and is symmetric.
    p, seed = 0.3, 1234
    adj_t = inner_product_decoder(z, dropout=p, training=True, seed=seed, tile=128)
    adj_t = jax.block_until_ready(adj_t)
    keep = jax.random.bernoulli(jax.random.PRNGKey(seed), 1.0 - p, z.shape)
    z_drop = jnp.where(keep, z * (1.0 / (1.0 - p)), jnp.zeros_like(z))
    ref_t = jax.nn.sigmoid(jnp.dot(z_drop, z_drop.T,
                                   precision=jax.lax.Precision.HIGHEST))
    assert adj_t.shape == (N, N)
    assert bool(jnp.all(jnp.isfinite(adj_t)))
    assert bool(jnp.all((adj_t >= 0.0) & (adj_t <= 1.0)))
    assert jnp.allclose(adj_t, adj_t.T, atol=1e-5), "training-mode adjacency not symmetric"
    assert jnp.allclose(adj_t, ref_t, atol=1e-5), "training-mode result differs from reference"

    print("KERNEL_OK")
</pallas_src>

<mosaic_0001>
module attributes {stable_mosaic.version = 11 : i64} {
  func.func @_ipd_resident_kernel(%arg0: i32, %arg1: i32, %arg2: memref<256x32xf32, #tpu.memory_space<vmem>>, %arg3: memref<128x128xf32, #tpu.memory_space<vmem>>) attributes {dimension_semantics = [#tpu.dimension_semantics<parallel>, #tpu.dimension_semantics<parallel>], iteration_bounds = array<i64: 2, 2>, scalar_prefetch = 0 : i64, scratch_operands = 0 : i64, tpu.core_type = #tpu.core_type<tc>, window_params = [{pipeline_mode = #tpu.pipeline_mode<synchronous>, transform_indices = @transform_0, window_bounds = array<i64: 256, 32>}, {transform_indices = @transform_1, window_bounds = array<i64: 128, 128>}]} {
    %c128_i32 = arith.constant 128 : i32
    %0 = arith.muli %arg0, %c128_i32 : i32
    %1 = tpu.assume_multiple %0, 128 : i32
    %2 = arith.index_cast %1 : i32 to index
    %c0 = arith.constant 0 : index
    %3 = vector.load %arg2[%2, %c0] : memref<256x32xf32, #tpu.memory_space<vmem>>, vector<128x32xf32>
    %c128_i32_0 = arith.constant 128 : i32
    %4 = arith.muli %arg1, %c128_i32_0 : i32
    %5 = tpu.assume_multiple %4, 128 : i32
    %6 = arith.index_cast %5 : i32 to index
    %c0_1 = arith.constant 0 : index
    %7 = vector.load %arg2[%6, %c0_1] : memref<256x32xf32, #tpu.memory_space<vmem>>, vector<128x32xf32>
    %cst = arith.constant dense<0.000000e+00> : vector<128x128xf32>
    %8 = tpu.matmul %3, %7, %cst {dimension_numbers = #tpu.dot_dimension_numbers<[1], [1], [0], [0], [0, 0, 1, 0], [], []>, precision = #tpu.contract_precision<fp32>} : vector<128x32xf32>, vector<128x32xf32>, vector<128x128xf32> -> vector<128x128xf32>
    %cst_2 = arith.constant 5.000000e-01 : f32
    %9 = vector.broadcast %cst_2 : f32 to vector<128x128xf32>
    %10 = arith.mulf %9, %8 : vector<128x128xf32>
    %11 = math.tanh %10 : vector<128x128xf32>
    %cst_3 = arith.constant 1.000000e+00 : f32
    %12 = vector.broadcast %cst_3 : f32 to vector<128x128xf32>
    %13 = arith.addf %11, %12 : vector<128x128xf32>
    %cst_4 = arith.constant 5.000000e-01 : f32
    %14 = vector.broadcast %cst_4 : f32 to vector<128x128xf32>
    %15 = arith.mulf %14, %13 : vector<128x128xf32>
    %c0_5 = arith.constant 0 : index
    %c0_6 = arith.constant 0 : index
    %16 = vector.load %arg3[%c0_5, %c0_6] : memref<128x128xf32, #tpu.memory_space<vmem>>, vector<128x128xf32>
    tpu.vector_store %arg3[%c0_5, %c0_6], %15 {strides = array<i32>} : memref<128x128xf32, #tpu.memory_space<vmem>>, vector<128x128xf32>,
    return
  }
  func.func @transform_0(%arg0: i32, %arg1: i32) -> (i32, i32) {
    %c0_i32 = arith.constant 0 : i32
    %c0_i32_0 = arith.constant 0 : i32
    %c0_i32_1 = arith.constant 0 : i32
    return %c0_i32, %c0_i32_0 : i32, i32
  }
  func.func @transform_1(%arg0: i32, %arg1: i32) -> (i32, i32) {
    %c0_i32 = arith.constant 0 : i32
    return %arg0, %arg1 : i32, i32
  }
}

</mosaic_0001>

<bundles_post_ra>
// kernel: tpu_custom_call.1
= control target key start
LH: loop header
LB: loop body
LE: loop exit
PB: predicated region body
PF: predicated region fallthrough
CT: control target
= control target key end

     0   :  { %6 = vsyncpa [#allocation3], 0  ;;  %s3390_s0 = inlined_call_operand.vmem [shape: f32[256,32], index: 0, kind: input, shape index: {}]   ;;  %s3391_s1 = inlined_call_operand.hbm [shape: f32[256,256], index: 1, kind: output, shape index: {}]  }
   0x1   :  { %8 = vsyncpa [#allocation3 + $0x1], 0  ;;  %s2448_s6 = smov 0   ;;  %s2450_s7 = smov 0  }
   0x2   :  { %s2452_s8 = smov 0   ;;  %s2454_s9 = smov 0  }
   0x3   :  { %s2456_s10 = smov 0   ;;  %s2458_s11 = smov 0  }
   0x4   :  { %s2460_s12 = smov 0   ;;  %s2462_s13 = smov 0  }
   0x5 LB: > { %s1692_s14 = sadd.s32 4294967295, %s2432_s13   ;;  %s1693_s15 = sadd.s32 4294967294, %s2432_s13   ;;  %s2432_s13 = sphi %s2462_s13, %s14_s13   ;;  %s2428_s12 = sphi %s2460_s12, %s3552_s12   ;;  %s2424_s11 = sphi %s2458_s11, %s3551_s11   ;;  %s2420_s10 = sphi %s2456_s10, %s3550_s10   ;;  %s2416_s9 = sphi %s2454_s9, %s3549_s9   ;;  %s2412_s8 = sphi %s2452_s8, %s3548_s8   ;;  %s2408_s7 = sphi %s2450_s7, %s3547_s7   ;;  %s2404_s6 = sphi %s2448_s6, %s3546_s6  }
   0x6   : > { %s23_s16 = sadd.s32 1, %s2424_s11  ;;  %s26_s17 = sadd.s32 1, %s2428_s12 }
   0x7   : > { %p24_p0 = scmp.ge.s32.totalorder %s23_s16, 2  ;;  %p66_p1 = scmp.ne.s32.totalorder %s2412_s8, %s2408_s7 }
   0x8   : > { %p67_p2 = scmp.eq.s32.totalorder %s1692_s14, 3  ;;  %p72_p5 = scmp.ne.s32.totalorder %s2408_s7, %s2404_s6 }
   0x9   : > { %s3554_s16 = smov (%p24_p0, %s23_s16), 0  ;;  %s3556_s17 = smov (!%p24_p0, %s26_s17), %s2428_s12 }
   0xa   : > { %s52_s18 = ssub.s32 %s2424_s11, %s3554_s16  ;;  %p2499_p3 = por %p67_p2, %p66_p1 }
   0xb   : > { %p28_p4 = scmp.ge.s32.totalorder %s3556_s17, 2  ;;  %p73_p6 = scmp.eq.s32.totalorder %s1693_s15, 3 }
   0xc   : > { %p1695_p7 = scmp.ge.s32.totalorder %s2432_s13, 1  ;;  %p94_p9 = scmp.lt.s32.totalorder %s2432_s13, 5 }
   0xd   : > { %s3558_s17 = smov (%p28_p4, %s3556_s17), 0  ;;  %p2508_p8 = por %p73_p6, %p72_p5 }
   0xe   : > { %s51_s21 = ssub.s32 %s2428_s12, %s3558_s17  ;;  %s56_s22 = sadd.s32 1, %s2412_s8 }
   0xf   : > { %s53_s23 = sor.u32 %s52_s18, %s51_s21  ;;  %p95_p10 = pnand %p1695_p7, %p94_p9 }
  0x10   : > { %p54_p11 = scmp.eq.s32.totalorder %s53_s23, 0 }
  0x11   : > { %98 = sbr.rel (%p95_p10) target bundleno = 489 (0x1e9), region = 24 }
  0x12   : > { %s2517_s24 = scalar_select %p54_p11, %s2412_s8, %s56_s22  }
  0x16   : > { %s1698_s25 = sshll.u32 %s2416_s9, 7  ;;  %vm146_vm0 = vcmask 261120   ;;  %s1697_s29 = sshll.u32 %s2420_s10, 7 }
  0x17   : > { %s2523_s28 = scalar_lea.vmem %s3390_s0, %s1698_s25  ;;  %s2608_s3 = scalar_lea.vmem %s3390_s0, %s1697_s29 }
  0x18   : > { %v145_v0 = vld [vmem:[%s2523_s28 + $0x78] sm:$0xff]  ;;  %v144_v1 = vld [vmem:[%s2523_s28 + $0x70] sm:$0xff]  ;;  %v143_v2 = vld [vmem:[%s2523_s28 + $0x68] sm:$0xff]  ;;  %s106_s4 = sand.u32 1, %s2408_s7   ;;  %s1705_s15 = sshll.u32 %s2420_s10, 5 }
  0x19   : > { %v241_v3 = vsel %vm146_vm0, %v145_v0, 0  ;;  %v238_v4 = vsel %vm146_vm0, %v144_v1, 0  ;;  %v235_v5 = vsel %vm146_vm0, %v143_v2, 0  ;;  %v142_v6 = vld [vmem:[%s2523_s28 + $0x60] sm:$0xff]  ;;  %v141_v7 = vld [vmem:[%s2523_s28 + $0x58] sm:$0xff]  ;;  %v140_v12 = vld [vmem:[%s2523_s28 + $0x50] sm:$0xff]  ;;  %s1622_s18 = sadd.s32 %s2416_s9, %s1705_s15 }
  0x1a   : > { %v2533_v8 = vand.u32 4294901760, %v241_v3  ;;  %v2535_v9 = vand.u32 4294901760, %v238_v4  ;;  %v2537_v10 = vand.u32 4294901760, %v235_v5  ;;  %v232_v11 = vsel %vm146_vm0, %v142_v6, 0  ;;  %v139_v24 = vld [vmem:[%s2523_s28 + $0x48] sm:$0xff]  ;;  %v138_v34 = vld [vmem:[%s2523_s28 + $0x40] sm:$0xff] }
  0x1b   : > { %v2541_v13 = vand.u32 4294901760, %v232_v11  ;;  %v229_v14 = vsel %vm146_vm0, %v141_v7, 0  ;;  %v226_v19 = vsel %vm146_vm0, %v140_v12, 0  ;;  %v223_v28 = vsel %vm146_vm0, %v139_v24, 0  ;;  %v137_v41 = vld [vmem:[%s2523_s28 + $0x38] sm:$0xff]  ;;  %v112_v48 = vld [vmem:[%s2608_s3] sm:$0xff] }
  0x1c   : > { %1898 = vmatprep.subr.mxu0 %v2533_v8  ;;  %v2546_v15 = vsub.f32 %v241_v3, %v2533_v8  ;;  %v2549_v16 = vsub.f32 %v238_v4, %v2535_v9  ;;  %v2552_v17 = vsub.f32 %v235_v5, %v2537_v10  ;;  %v2555_v18 = vand.u32 4294901760, %v229_v14  ;;  %v136_v49 = vld [vmem:[%s2523_s28 + $0x30] sm:$0xff]  ;;  %v135_v57 = vld [vmem:[%s2523_s28 + $0x28] sm:$0xff]  ;;  %v134_v2 = vld [vmem:[%s2523_s28 + $0x20] sm:$0xff]  ;;  %s3294_s5 = sshll.u32 %s106_s4, 7  ;;  %s1702_s21 = sshll.u32 %s1622_s18, 7 }
  0x1d   : > { %1899 = vmatpush3.xpose.msra.mxu0 %v2533_v8  ;;  %v2569_v23 = vsub.f32 %v232_v11, %v2541_v13  ;;  %v2577_v27 = vand.u32 4294901760, %v226_v19  ;;  %v2592_v35 = vand.u32 4294901760, %v223_v28  ;;  %v220_v40 = vsel %vm146_vm0, %v138_v34, 0  ;;  %v132_v34 = vld [vmem:[%s2523_s28 + $0x10] sm:$0xff]  ;;  %s3306_s14 = scalar_lea.vmem [#allocation2], %s3294_s5  ;;  %s3330_s23 = scalar_lea.hbm %s3391_s1, %s1702_s21 }
  0x1e   : > { %1900 = vmatprep.subr.mxu0 %v2535_v9  ;;  %v2560_v20 = vand.u32 4294901760, %v2546_v15  ;;  %v2563_v21 = vand.u32 4294901760, %v2549_v16  ;;  %v2566_v22 = vand.u32 4294901760, %v2552_v17  ;;  %v2581_v29 = vsub.f32 %v229_v14, %v2555_v18  ;;  %s1625_s10 = sshll.u32 %s3306_s14, 4  ;;  %s3339_s25 = scalar_lea.sflag [#allocation3], %s106_s4  ;;  %s3333_s10 = int_to_ptr.vmem [resolvable:$true] %s1625_s10 }
  0x1f   : > { %v2587_v33 = vand.u32 4294901760, %v2569_v23  ;;  %v2595_v36 = vsub.f32 %v226_v19, %v2577_v27  ;;  %v2615_v43 = vsub.f32 %v223_v28, %v2592_v35  ;;  %v2620_v46 = vand.u32 4294901760, %v220_v40  ;;  %v133_v19 = vld [vmem:[%s2523_s28 + $0x18] sm:$0xff]  ;;  %s2340_s26 = scalar_lea.vmem %s3333_s10, 2048  ;;  %s2434_s27 = smov [#allocation2]  }
  0x20   : > { %3449 = vst [vmem:[#allocation5_spill] sm:$0xff] %v2560_v20  ;;  %3450 = vst [vmem:[#allocation6_spill] sm:$0xff] %v2563_v21  ;;  %v488_v25 = vsub.f32 %v2546_v15, %v2560_v20  ;;  %v495_v26 = vsub.f32 %v2549_v16, %v2563_v21  ;;  %v502_v32 = vsub.f32 %v2552_v17, %v2566_v22  ;;  %v2601_v39 = vand.u32 4294901760, %v2581_v29  ;;  %v123_v21 = vld [vmem:[%s2608_s3 + $0x58] sm:$0xff]  ;;  %p2341_p12 = scmp.ne.s32.totalorder %s3333_s10, %s2340_s26 }
  0x21   : > { %3451 = vst [vmem:[#allocation7_spill] sm:$0xff] %v2566_v22  ;;  %1901 = vmatpush3.xpose.msra.mxu0 %v2535_v9  ;;  %3452 = vst [vmem:[#allocation8_spill] sm:$0xff] %v2587_v33  ;;  %v509_v38 = vsub.f32 %v2569_v23, %v2587_v33  ;;  %v2612_v42 = vand.u32 4294901760, %v2595_v36  ;;  %v217_v47 = vsel %vm146_vm0, %v137_v41, 0  ;;  %v2631_v52 = vand.u32 4294901760, %v2615_v43  ;;  %v122_v22 = vld [vmem:[%s2608_s3 + $0x50] sm:$0xff] }
  0x22   : > { %1902 = vmatprep.subr.mxu0 %v2537_v10  ;;  %v489_v30 = vand.u32 4294901760, %v488_v25  ;;  %v496_v31 = vand.u32 4294901760, %v495_v26  ;;  %v503_v37 = vand.u32 4294901760, %v502_v32  ;;  %3453 = vst [vmem:[#allocation9_spill] sm:$0xff] %v2601_v39  ;;  %v516_v45 = vsub.f32 %v2581_v29, %v2601_v39  ;;  %p2342_p13 = pnand %p2341_p12, %p2499_p3 }
  0x23   : > { %3454 = vst [vmem:[#allocation10_spill] sm:$0xff] %v2612_v42  ;;  %v510_v44 = vand.u32 4294901760, %v509_v38  ;;  %v523_v50 = vsub.f32 %v2595_v36, %v2612_v42  ;;  %v2628_v51 = vand.u32 4294901760, %v217_v47  ;;  %3455 = vst [vmem:[#allocation11_spill] sm:$0xff] %v2631_v52  ;;  %v148_v53 = vsel %vm146_vm0, %v112_v48, 0 }
  0x24   : > { %1954 = vmatprep.subr.mxu1 %v489_v30  ;;  %v517_v54 = vand.u32 4294901760, %v516_v45  ;;  %v214_v55 = vsel %vm146_vm0, %v136_v49, 0  ;;  %v2637_v56 = vsub.f32 %v220_v40, %v2620_v46  ;;  %v2640_v58 = vand.u32 4294901760, %v148_v53  ;;  %p2343_p0 = pneg %p2342_p13 }
  0x25   : > { %1903 = vmatpush3.xpose.msra.mxu0 %v2537_v10  ;;  %1955 = vmatpush3.xpose.msra.mxu1 %v489_v30  ;;  %v524_v60 = vand.u32 4294901760, %v523_v50  ;;  %v2647_v61 = vand.u32 4294901760, %v214_v55  ;;  %v211_v62 = vsel %vm146_vm0, %v135_v57, 0  ;;  %v530_v63 = vsub.f32 %v2615_v43, %v2631_v52  ;;  %v127_v50 = vld [vmem:[%s2608_s3 + $0x78] sm:$0xff] }
  0x26   : > { %1904 = vmatprep.subr.mxu0 %v2541_v13  ;;  %1956 = vmatprep.subr.mxu1 %v496_v31  ;;  %3456 = vst [vmem:[#allocation12_spill] sm:$0xff] %v2640_v58  ;;  %v2643_v59 = vsub.f32 %v148_v53, %v2640_v58  ;;  %v2654_v0 = vand.u32 4294901760, %v2637_v56  ;;  %v2657_v1 = vsub.f32 %v217_v47, %v2628_v51  ;;  %v2665_v5 = vand.u32 4294901760, %v211_v62  ;;  %v131_v47 = vld [vmem:[%s2523_s28 + $0x8] sm:$0xff] }
  0x27   : > { %1986 = vmatprep.mubr.f32.mxu1 %v2640_v58  ;;  %v208_v6 = vsel %vm146_vm0, %v134_v2, 0  ;;  %v2669_v7 = vsub.f32 %v214_v55, %v2647_v61  ;;  %v531_v11 = vand.u32 4294901760, %v530_v63  ;;  %v205_v26 = vsel %vm146_vm0, %v133_v19, 0 }
  0x28   : > { %3457 = vst [vmem:[#allocation13_spill] sm:$0xff] %v2654_v0  ;;  %v3392_v3 = vand.u32 4294901760, %v2643_v59  ;;  %v537_v12 = vsub.f32 %v2637_v56, %v2654_v0  ;;  %v2675_v14 = vand.u32 4294901760, %v2657_v1  ;;  %v2679_v25 = vand.u32 4294901760, %v208_v6  ;;  %v120_v0 = vld [vmem:[%s2608_s3 + $0x40] sm:$0xff] }
  0x29   : > { %1905 = vmatpush3.xpose.msra.mxu0 %v2541_v13  ;;  %1957 = vmatpush3.xpose.msra.mxu1 %v496_v31  ;;  %v2686_v31 = vand.u32 4294901760, %v2669_v7  ;;  %v2689_v32 = vsub.f32 %v211_v62, %v2665_v5  ;;  %v202_v38 = vsel %vm146_vm0, %v132_v34, 0  ;;  %v199_v49 = vsel %vm146_vm0, %v131_v47, 0  ;;  %v130_v62 = vld [vmem:[%s2523_s28] sm:$0xff]  ;;  %s2344_s28 = sshll.u32 %s2434_s27, 4  ;;  %s2345_s28 = int_to_ptr.vmem [resolvable:$false] %s2344_s28 }
  0x2a   : > { %1906 = vmatprep.subr.mxu0 %v2555_v18  ;;  %1958 = vmatprep.subr.mxu1 %v503_v37  ;;  %v327_v4 = vsub.f32 %v2643_v59, %v3392_v3  ;;  %3458 = vst [vmem:[#allocation14_spill] sm:$0xff] %v2675_v14  ;;  %v538_v28 = vand.u32 4294901760, %v537_v12  ;;  %v544_v30 = vsub.f32 %v2657_v1, %v2675_v14  ;;  %v2707_v48 = vand.u32 4294901760, %v202_v38  ;;  %s2346_s29 = scalar_lea.vmem %s2345_s28, 4096  ;;  %p2347_p1 = scmp.lt.s32.totalorder %s3333_s10, %s2345_s28 }
  0x2b   : > { %3459 = vst [vmem:[#allocation15_spill] sm:$0xff] %v2686_v31  ;;  %v551_v41 = vsub.f32 %v2669_v7, %v2686_v31  ;;  %v2703_v45 = vsub.f32 %v208_v6, %v2679_v25  ;;  %v2723_v63 = vsel %vm146_vm0, %v127_v50, 0  ;;  %v2726_v2 = vand.u32 4294901760, %v199_v49  ;;  %v114_v6 = vld [vmem:[%s2608_s3 + $0x10] sm:$0xff]  ;;  %v117_v50 = vld [vmem:[%s2608_s3 + $0x28] sm:$0xff]  ;;  %p2348_p2 = scmp.lt.s32.totalorder %s2346_s29, %s2340_s26 }
  0x2c   : > { %v328_v24 = vand.u32 4294901760, %v327_v4  ;;  %v545_v40 = vand.u32 4294901760, %v544_v30  ;;  %3461 = vst [vmem:[#allocation17_spill] sm:$0xff] %v2707_v48  ;;  %v154_v34 = vsel %vm146_vm0, %v114_v6, 0  ;;  %v163_v3 = vsel %vm146_vm0, %v117_v50, 0 }
  0x2d   : > { %1907 = vmatpush3.xpose.msra.mxu0 %v2555_v18  ;;  %1959 = vmatpush3.xpose.msra.mxu1 %v503_v37  ;;  %v2693_v37 = vand.u32 4294901760, %v205_v26  ;;  %v552_v53 = vand.u32 4294901760, %v551_v41  ;;  %v2715_v55 = vand.u32 4294901760, %v2703_v45  ;;  %3463 = vst [vmem:[#allocation19_spill] sm:$0xff] %v2726_v2  ;;  %v2747_v41 = vsub.f32 %v199_v49, %v2726_v2  ;;  %p2349_p4 = por %p2348_p2, %p2347_p1 }
  0x2e   : > { %1908 = vmatprep.subr.mxu0 %v2577_v27  ;;  %1960 = vmatprep.subr.mxu1 %v510_v44  ;;  %v172_v42 = vsel %vm146_vm0, %v120_v0, 0 }
  0x2f   : > { %1930 = vmatprep.mubr.f32.mxu0 %v328_v24  ;;  %3462 = vst [vmem:[#allocation18_spill] sm:$0xff] %v2715_v55  ;;  %v2718_v57 = vsub.f32 %v205_v26, %v2693_v37  ;;  %v565_v12 = vsub.f32 %v2703_v45, %v2715_v55  ;;  %v2737_v24 = vsub.f32 %v202_v38, %v2707_v48  ;;  %v115_v26 = vld [vmem:[%s2608_s3 + $0x18] sm:$0xff]  ;;  %p2350_p5 = pnand %p2349_p4, %p2343_p0 }
  0x30   : > { %v157_v47 = vsel %vm146_vm0, %v115_v26, 0  ;;  %v119_v55 = vld [vmem:[%s2608_s3 + $0x38] sm:$0xff] }
  0x31   : > { %1909 = vmatpush3.xpose.msra.mxu0 %v2577_v27  ;;  %1961 = vmatpush3.xpose.msra.mxu1 %v510_v44  ;;  %v2700_v44 = vand.u32 4294901760, %v2689_v32  ;;  %v2734_v19 = vand.u32 4294901760, %v2718_v57  ;;  %v566_v38 = vand.u32 4294901760, %v565_v12  ;;  %v2765_v26 = vand.u32 4294901760, %v157_v47  ;;  %v118_v12 = vld [vmem:[%s2608_s3 + $0x30] sm:$0xff] }
  0x32   : > { %1910 = vmatprep.subr.mxu0 %v2592_v35  ;;  %1962 = vmatprep.subr.mxu1 %v517_v54  ;;  %v166_v58 = vsel %vm146_vm0, %v118_v12, 0 }
  0x33   : > { %3460 = vst [vmem:[#allocation16_spill] sm:$0xff] %v2700_v44  ;;  %3464 = vst [vmem:[#allocation20_spill] sm:$0xff] %v2734_v19  ;;  %v2804_v14 = vand.u32 4294901760, %v166_v58 }
  0x35   : > { %1911 = vmatpush3.xpose.msra.mxu0 %v2592_v35  ;;  %1963 = vmatpush3.xpose.msra.mxu1 %v517_v54  ;;  %v558_v54 = vsub.f32 %v2689_v32, %v2700_v44 }
  0x36   : > { %1912 = vmatprep.subr.mxu0 %v2620_v46  ;;  %1964 = vmatprep.subr.mxu1 %v524_v60 }
  0x39   : > { %1913 = vmatpush3.xpose.msra.mxu0 %v2620_v46  ;;  %1965 = vmatpush3.xpose.msra.mxu1 %v524_v60  ;;  %v113_v60 = vld [vmem:[%s2608_s3 + $0x8] sm:$0xff] }
  0x3a   : > { %1914 = vmatprep.subr.mxu0 %v2628_v51  ;;  %1966 = vmatprep.subr.mxu1 %v531_v11  ;;  %v151_v4 = vsel %vm146_vm0, %v113_v60, 0 }
  0x3b   : > { %v2741_v30 = vand.u32 4294901760, %v151_v4 }
  0x3d   : > { %1915 = vmatpush3.xpose.msra.mxu0 %v2628_v51  ;;  %1967 = vmatpush3.xpose.msra.mxu1 %v531_v11  ;;  %v559_v11 = vand.u32 4294901760, %v558_v54  ;;  %v572_v54 = vsub.f32 %v2718_v57, %v2734_v19  ;;  %v2763_v6 = vsub.f32 %v151_v4, %v2741_v30  ;;  %v2771_v19 = vand.u32 4294901760, %v2747_v41 }
  0x3e   : > { %1916 = vmatprep.subr.mxu0 %v2647_v61  ;;  %1968 = vmatprep.subr.mxu1 %v538_v28 }
  0x3f   : > { %3467 = vst [vmem:[#allocation23_spill] sm:$0xff] %v2763_v6  ;;  %3468 = vst [vmem:[#allocation24_spill] sm:$0xff] %v2771_v19 }
  0x41   : > { %1917 = vmatpush3.xpose.msra.mxu0 %v2647_v61  ;;  %1969 = vmatpush3.xpose.msra.mxu1 %v538_v28  ;;  %v196_v28 = vsel %vm146_vm0, %v130_v62, 0  ;;  %v2757_v62 = vand.u32 4294901760, %v2737_v24 }
  0x42   : > { %1918 = vmatprep.subr.mxu0 %v2665_v5  ;;  %1970 = vmatprep.subr.mxu1 %v545_v40  ;;  %v2754_v60 = vand.u32 4294901760, %v196_v28 }
  0x43   : > { %3466 = vst [vmem:[#allocation22_spill] sm:$0xff] %v2757_v62  ;;  %v579_v4 = vsub.f32 %v2737_v24, %v2757_v62  ;;  %v169_v62 = vsel %vm146_vm0, %v119_v55, 0  ;;  %v121_v55 = vld [vmem:[%s2608_s3 + $0x48] sm:$0xff] }
  0x44   : > { %3465 = vst [vmem:[#allocation21_spill] sm:$0xff] %v2754_v60  ;;  %v2778_v44 = vsub.f32 %v196_v28, %v2754_v60  ;;  %v586_v28 = vsub.f32 %v2747_v41, %v2771_v19  ;;  %v2811_v19 = vand.u32 4294901760, %v169_v62  ;;  %v175_v52 = vsel %vm146_vm0, %v121_v55, 0 }
  0x45   : > { %1919 = vmatpush3.xpose.msra.mxu0 %v2665_v5  ;;  %1971 = vmatpush3.xpose.msra.mxu1 %v545_v40  ;;  %v116_v40 = vld [vmem:[%s2608_s3 + $0x20] sm:$0xff] }
  0x46   : > { %1920 = vmatprep.subr.mxu0 %v2679_v25  ;;  %1972 = vmatprep.subr.mxu1 %v552_v53  ;;  %v160_v49 = vsel %vm146_vm0, %v116_v40, 0  ;;  %v573_v40 = vand.u32 4294901760, %v572_v54  ;;  %3469 = vst [vmem:[#allocation25_spill] sm:$0xff] %v2778_v44  ;;  %v2790_v54 = vsub.f32 %v157_v47, %v2765_v26  ;;  %v2799_v12 = vand.u32 4294901760, %v2778_v44 }
  0x47   : > { %v2780_v50 = vand.u32 4294901760, %v160_v49  ;;  %v587_v33 = vand.u32 4294901760, %v586_v28 }
  0x48   : > { %3471 = vst [vmem:[#allocation27_spill] sm:$0xff] %v2790_v54  ;;  %3472 = vst [vmem:[#allocation28_spill] sm:$0xff] %v2799_v12  ;;  %v593_v0 = vsub.f32 %v2778_v44, %v2799_v12  ;;  %v3477_v12 = vand.u32 4294901760, %v2790_v54 }
  0x49   : > { %1921 = vmatpush3.xpose.msra.mxu0 %v2679_v25  ;;  %1973 = vmatpush3.xpose.msra.mxu1 %v552_v53  ;;  %v2759_v53 = vand.u32 4294901760, %v154_v34  ;;  %v2802_v47 = vsub.f32 %v160_v49, %v2780_v50  ;;  %v2828_v49 = vand.u32 4294901760, %v172_v42 }
  0x4a   : > { %1922 = vmatprep.subr.mxu0 %v2693_v37  ;;  %1974 = vmatprep.subr.mxu1 %v559_v11 }
  0x4b   : > { %v2783_v31 = vsub.f32 %v154_v34, %v2759_v53  ;;  %v580_v34 = vand.u32 4294901760, %v579_v4  ;;  %3473 = vst [vmem:[#allocation29_spill] sm:$0xff] %v2802_v47  ;;  %v3475_v4 = vand.u32 4294901760, %v2763_v6 }
  0x4d   : > { %1923 = vmatpush3.xpose.msra.mxu0 %v2693_v37  ;;  %1975 = vmatpush3.xpose.msra.mxu1 %v559_v11  ;;  %3470 = vst [vmem:[#allocation26_spill] sm:$0xff] %v2783_v31  ;;  %v2785_v11 = vand.u32 4294901760, %v163_v3  ;;  %v337_v39 = vsub.f32 %v2763_v6, %v3475_v4  ;;  %v2826_v4 = vsub.f32 %v166_v58, %v2804_v14  ;;  %v2841_v58 = vand.u32 4294901760, %v175_v52 }
  0x4e   : > { %1924 = vmatprep.subr.mxu0 %v2707_v48  ;;  %1976 = vmatprep.subr.mxu1 %v566_v38  ;;  %v2836_v6 = vsub.f32 %v169_v62, %v2811_v19  ;;  %v594_v62 = vand.u32 4294901760, %v593_v0 }
  0x4f   : > { %v338_v20 = vand.u32 4294901760, %v337_v39  ;;  %v3478_v39 = vand.u32 4294901760, %v2802_v47 }
  0x51   : > { %1925 = vmatpush3.xpose.msra.mxu0 %v2707_v48  ;;  %1977 = vmatpush3.xpose.msra.mxu1 %v566_v38  ;;  %v2809_v38 = vsub.f32 %v163_v3, %v2785_v11  ;;  %v357_v3 = vsub.f32 %v2790_v54, %v3477_v12  ;;  %v367_v55 = vsub.f32 %v2802_v47, %v3478_v39  ;;  %v126_v12 = vld [vmem:[%s2608_s3 + $0x70] sm:$0xff] }
  0x52   : > { %1926 = vmatprep.subr.mxu0 %v2726_v2  ;;  %1978 = vmatprep.subr.mxu1 %v573_v40  ;;  %v2853_v54 = vsub.f32 %v172_v42, %v2828_v49  ;;  %v2863_v39 = vsub.f32 %v175_v52, %v2841_v58 }
  0x53   : > { %3474 = vst [vmem:[#allocation30_spill] sm:$0xff] %v2809_v38  ;;  %v358_v0 = vand.u32 4294901760, %v357_v3 }
  0x54   : > { %v406_v52 = vand.u32 4294901760, %v2853_v54 }
  0x55   : > { %1927 = vmatpush3.xpose.msra.mxu0 %v2726_v2  ;;  %1979 = vmatpush3.xpose.msra.mxu1 %v573_v40  ;;  %v3476_v40 = vand.u32 4294901760, %v2783_v31  ;;  %v178_v2 = vsel %vm146_vm0, %v122_v22, 0  ;;  %v125_v22 = vld [vmem:[%s2608_s3 + $0x68] sm:$0xff] }
  0x56   : > { %1928 = vmatprep.subr.mxu0 %v2754_v60  ;;  %1980 = vmatprep.subr.mxu1 %v580_v34  ;;  %v2860_v44 = vand.u32 4294901760, %v178_v2 }
  0x57   : > { %v347_v28 = vsub.f32 %v2783_v31, %v3476_v40  ;;  %v181_v40 = vsel %vm146_vm0, %v123_v21, 0  ;;  %v124_v31 = vld [vmem:[%s2608_s3 + $0x60] sm:$0xff] }
  0x58   : > { %v2865_v47 = vand.u32 4294901760, %v181_v40  ;;  %v184_v42 = vsel %vm146_vm0, %v124_v31, 0  ;;  %v3481_v31 = vand.u32 4294901760, %v2836_v6 }
  0x59   : > { %1929 = vmatpush3.xpose.msra.mxu0 %v2754_v60  ;;  %1981 = vmatpush3.xpose.msra.mxu1 %v580_v34  ;;  %v348_v60 = vand.u32 4294901760, %v347_v28  ;;  %v3479_v34 = vand.u32 4294901760, %v2809_v38  ;;  %v187_v28 = vsel %vm146_vm0, %v125_v22, 0  ;;  %v2882_v22 = vand.u32 4294901760, %v184_v42 }
  0x5a   : > { %1982 = vmatprep.subr.mxu1 %v587_v33  ;;  %2010 = vmatprep.subr.mxu0 %v2546_v15 }
  0x5b   : > { %v377_v21 = vsub.f32 %v2809_v38, %v3479_v34  ;;  %v368_v34 = vand.u32 4294901760, %v367_v55  ;;  %v3445_v55 = vand.u32 4294901760, %v2863_v39  ;;  %v2886_v38 = vsub.f32 %v181_v40, %v2865_v47 }
  0x5c   : > { %1931 = vmatmul.mubr.f32.vlgmr.msra.gmra.mxu0 %v338_v20  ;;  %v3480_v20 = vand.u32 4294901760, %v2826_v4 }
  0x5d   : > { %1983 = vmatpush3.xpose.msra.mxu1 %v587_v33  ;;  %2011 = vmatpush3.xpose.msra.mxu0 %v2546_v15  ;;  %v378_v48 = vand.u32 4294901760, %v377_v21  ;;  %v397_v33 = vsub.f32 %v2836_v6, %v3481_v31  ;;  %v2880_v15 = vsub.f32 %v178_v2, %v2860_v44  ;;  %v407_v21 = vsub.f32 %v2853_v54, %v406_v52 }
  0x5e   : > { %1984 = vmatprep.subr.mxu1 %v594_v62  ;;  %2012 = vmatprep.subr.mxu0 %v2549_v16  ;;  %v387_v3 = vsub.f32 %v2826_v4, %v3480_v20  ;;  %v2888_v20 = vand.u32 4294901760, %v187_v28  ;;  %v2899_v31 = vsub.f32 %v184_v42, %v2882_v22 }
  0x5f   : > { %1933 = vmatprep.mubr.f32.mxu0 %v348_v60  ;;  %v190_v60 = vsel %vm146_vm0, %v126_v12, 0  ;;  %v426_v40 = vand.u32 4294901760, %v2880_v15 }
  0x60   : > { %1934 = vmatmul.mubr.f32.gmra.mxu0 %v358_v0  ;;  %v388_v2 = vand.u32 4294901760, %v387_v3  ;;  %v398_v0 = vand.u32 4294901760, %v397_v33  ;;  %v2901_v12 = vand.u32 4294901760, %v190_v60  ;;  %v2909_v3 = vsub.f32 %v187_v28, %v2888_v20 }
  0x61   : > { %1985 = vmatpush3.xpose.msra.mxu1 %v594_v62  ;;  %2013 = vmatpush3.xpose.msra.mxu0 %v2549_v16  ;;  %v417_v16 = vsub.f32 %v2863_v39, %v3445_v55  ;;  %v3446_v62 = vand.u32 4294901760, %v2886_v38  ;;  %v427_v42 = vsub.f32 %v2880_v15, %v426_v40  ;;  %v446_v28 = vand.u32 4294901760, %v2899_v31 }
  0x62   : > { %2014 = vmatprep.subr.mxu0 %v2552_v17  ;;  %2066 = vmatprep.subr.mxu1 %v2533_v8  ;;  %v2924_v33 = vsub.f32 %v190_v60, %v2901_v12 }
  0x63   : > { %1936 = vmatprep.mubr.f32.mxu0 %v368_v34  ;;  %v2912_v34 = vand.u32 4294901760, %v2723_v63  ;;  %v437_v55 = vsub.f32 %v2886_v38, %v3446_v62  ;;  %v428_v60 = vand.u32 4294901760, %v427_v42 }
  0x64   : > { %1987 = vmatmul.mubr.f32.vlgmr.msra.gmra.mxu1 %v2741_v30  ;;  %1937 = vmatmul.mubr.f32.gmra.mxu0 %v378_v48  ;;  %v408_v48 = vand.u32 4294901760, %v407_v21 }
  0x65   : > { %2015 = vmatpush3.xpose.msra.mxu0 %v2552_v17  ;;  %2067 = vmatpush3.xpose.msra.mxu1 %v2533_v8  ;;  %v418_v17 = vand.u32 4294901760, %v417_v16  ;;  %v2933_v21 = vsub.f32 %v2723_v63, %v2912_v34  ;;  %v466_v16 = vand.u32 4294901760, %v2924_v33 }
  0x66   : > { %2016 = vmatprep.subr.mxu0 %v2569_v23  ;;  %2068 = vmatprep.subr.mxu1 %v2535_v9 }
  0x67   : > { %1989 = vmatprep.mubr.f32.mxu1 %v2759_v53  ;;  %1939 = vmatprep.mubr.f32.mxu0 %v388_v2  ;;  %v456_v2 = vand.u32 4294901760, %v2909_v3  ;;  %v476_v62 = vand.u32 4294901760, %v2933_v21 }
  0x68   : > { %1990 = vmatmul.mubr.f32.gmra.mxu1 %v2765_v26  ;;  %1940 = vmatmul.mubr.f32.gmra.mxu0 %v398_v0  ;;  %v447_v0 = vsub.f32 %v2899_v31, %v446_v28 }
  0x69   : > { %2017 = vmatpush3.xpose.msra.mxu0 %v2569_v23  ;;  %2069 = vmatpush3.xpose.msra.mxu1 %v2535_v9  ;;  %v438_v23 = vand.u32 4294901760, %v437_v55  ;;  %v457_v63 = vsub.f32 %v2909_v3, %v456_v2  ;;  %v467_v55 = vsub.f32 %v2924_v33, %v466_v16 }
  0x6a   : > { %2018 = vmatprep.subr.mxu0 %v2581_v29  ;;  %2070 = vmatprep.subr.mxu1 %v2537_v10 }
  0x6b   : > { %1992 = vmatprep.mubr.f32.mxu1 %v2780_v50  ;;  %1942 = vmatprep.mubr.f32.mxu0 %v408_v48  ;;  %v448_v48 = vand.u32 4294901760, %v447_v0  ;;  %v458_v42 = vand.u32 4294901760, %v457_v63  ;;  %v3493_v0 = vld [vmem:[#allocation7_spill] sm:$0xff] }
  0x6c   : > { %1993 = vmatmul.mubr.f32.gmra.mxu1 %v2785_v11  ;;  %1943 = vmatmul.mubr.f32.gmra.mxu0 %v418_v17  ;;  %v468_v17 = vand.u32 4294901760, %v467_v55  ;;  %v3497_v55 = vld [vmem:[#allocation8_spill] sm:$0xff] }
  0x6d   : > { %2019 = vmatpush3.xpose.msra.mxu0 %v2581_v29  ;;  %2071 = vmatpush3.xpose.msra.mxu1 %v2537_v10  ;;  %v477_v29 = vsub.f32 %v2933_v21, %v476_v62 }
  0x6e   : > { %2020 = vmatprep.subr.mxu0 %v2595_v36  ;;  %2072 = vmatprep.subr.mxu1 %v2541_v13 }
  0x6f   : > { %1995 = vmatprep.mubr.f32.mxu1 %v2804_v14  ;;  %1945 = vmatprep.mubr.f32.mxu0 %v428_v60  ;;  %v478_v60 = vand.u32 4294901760, %v477_v29  ;;  %v3500_v29 = vld [vmem:[#allocation9_spill] sm:$0xff] }
  0x70   : > { %1996 = vmatmul.mubr.f32.gmra.mxu1 %v2811_v19  ;;  %1946 = vmatmul.mubr.f32.gmra.mxu0 %v438_v23  ;;  %v3494_v23 = vld [vmem:[#allocation30_spill] sm:$0xff] }
  0x71   : > { %2021 = vmatpush3.xpose.msra.mxu0 %v2595_v36  ;;  %2073 = vmatpush3.xpose.msra.mxu1 %v2541_v13  ;;  %v3482_v36 = vand.u32 4294901760, %v2643_v59 }
  0x72   : > { %2022 = vmatprep.subr.mxu0 %v2615_v43  ;;  %2074 = vmatprep.subr.mxu1 %v2555_v18 }
  0x73   : > { %1998 = vmatprep.mubr.f32.mxu1 %v2828_v49  ;;  %1948 = vmatprep.mubr.f32.mxu0 %v448_v48 }
  0x74   : > { %1999 = vmatmul.mubr.f32.gmra.mxu1 %v2841_v58  ;;  %1949 = vmatmul.mubr.f32.gmra.mxu0 %v458_v42 }
  0x75   : > { %2023 = vmatpush3.xpose.msra.mxu0 %v2615_v43  ;;  %2075 = vmatpush3.xpose.msra.mxu1 %v2555_v18  ;;  %v3483_v43 = vld [vmem:[#allocation25_spill] sm:$0xff] }
  0x76   : > { %2024 = vmatprep.subr.mxu0 %v2637_v56  ;;  %2076 = vmatprep.subr.mxu1 %v2577_v27 }
  0x77   : > { %2001 = vmatprep.mubr.f32.mxu1 %v2860_v44  ;;  %1951 = vmatprep.mubr.f32.mxu0 %v468_v17  ;;  %v3501_v17 = vand.u32 4294901760, %v3494_v23 }
  0x78   : > { %2002 = vmatmul.mubr.f32.gmra.mxu1 %v2865_v47  ;;  %1952 = vmatmul.mubr.f32.gmra.mxu0 %v478_v60  ;;  %v3503_v60 = vld [vmem:[#allocation10_spill] sm:$0xff] }
  0x79   : > { %2025 = vmatpush3.xpose.msra.mxu0 %v2637_v56  ;;  %2077 = vmatpush3.xpose.msra.mxu1 %v2577_v27  ;;  %v3484_v56 = vld [vmem:[#allocation17_spill] sm:$0xff] }
  0x7a   : > { %2026 = vmatprep.subr.mxu0 %v2657_v1  ;;  %2078 = vmatprep.subr.mxu1 %v2592_v35 }
  0x7b   : > { %2004 = vmatprep.mubr.f32.mxu1 %v2882_v22  ;;  %2042 = vmatprep.mubr.f32.mxu0 %v2643_v59  ;;  %v3485_v59 = vld [vmem:[#allocation19_spill] sm:$0xff] }
  0x7c   : > { %2005 = vmatmul.mubr.f32.gmra.mxu1 %v2888_v20 }
  0x7d   : > { %2027 = vmatpush3.xpose.msra.mxu0 %v2657_v1  ;;  %2079 = vmatpush3.xpose.msra.mxu1 %v2592_v35  ;;  %v3486_v1 = vld [vmem:[#allocation5_spill] sm:$0xff] }
  0x7e   : > { %2028 = vmatprep.subr.mxu0 %v2669_v7  ;;  %2080 = vmatprep.subr.mxu1 %v2620_v46 }
  0x7f   : > { %2007 = vmatprep.mubr.f32.mxu1 %v2901_v12 }
  0x80   : > { %2008 = vmatmul.mubr.f32.gmra.mxu1 %v2912_v34 }
  0x81   : > { %2029 = vmatpush3.xpose.msra.mxu0 %v2669_v7  ;;  %2081 = vmatpush3.xpose.msra.mxu1 %v2620_v46  ;;  %v3487_v7 = vld [vmem:[#allocation23_spill] sm:$0xff] }
  0x82   : > { %2030 = vmatprep.subr.mxu0 %v2689_v32  ;;  %2082 = vmatprep.subr.mxu1 %v2628_v51  ;;  %v3495_v63 = vand.u32 4294901760, %v3487_v7 }
  0x83   : > { %2098 = vmatprep.mubr.f32.mxu1 %v3482_v36  ;;  %v3504_v36 = vand.u32 4294901760, %v2836_v6 }
  0x85   : > { %2031 = vmatpush3.xpose.msra.mxu0 %v2689_v32  ;;  %2083 = vmatpush3.xpose.msra.mxu1 %v2628_v51  ;;  %v3488_v32 = vld [vmem:[#allocation26_spill] sm:$0xff] }
  0x86   : > { %2032 = vmatprep.subr.mxu0 %v2703_v45  ;;  %2084 = vmatprep.subr.mxu1 %v2647_v61  ;;  %v3496_v48 = vand.u32 4294901760, %v3488_v32 }
  0x89   : > { %2033 = vmatpush3.xpose.msra.mxu0 %v2703_v45  ;;  %2085 = vmatpush3.xpose.msra.mxu1 %v2647_v61  ;;  %v3489_v45 = vld [vmem:[#allocation21_spill] sm:$0xff] }
  0x8a   : > { %2034 = vmatprep.subr.mxu0 %v2718_v57  ;;  %2086 = vmatprep.subr.mxu1 %v2665_v5 }
  0x8d   : > { %2035 = vmatpush3.xpose.msra.mxu0 %v2718_v57  ;;  %2087 = vmatpush3.xpose.msra.mxu1 %v2665_v5  ;;  %v3490_v57 = vld [vmem:[#allocation6_spill] sm:$0xff] }
  0x8e   : > { %2036 = vmatprep.subr.mxu0 %v2737_v24  ;;  %2088 = vmatprep.subr.mxu1 %v2679_v25 }
  0x91   : > { %2037 = vmatpush3.xpose.msra.mxu0 %v2737_v24  ;;  %2089 = vmatpush3.xpose.msra.mxu1 %v2679_v25  ;;  %v3491_v24 = vld [vmem:[#allocation27_spill] sm:$0xff] }
  0x92   : > { %2038 = vmatprep.subr.mxu0 %v2747_v41  ;;  %2090 = vmatprep.subr.mxu1 %v2693_v37  ;;  %v3498_v42 = vand.u32 4294901760, %v3491_v24 }
  0x95   : > { %2039 = vmatpush3.xpose.msra.mxu0 %v2747_v41  ;;  %2091 = vmatpush3.xpose.msra.mxu1 %v2693_v37  ;;  %v3492_v41 = vld [vmem:[#allocation29_spill] sm:$0xff] }
  0x96   : > { %2040 = vmatprep.subr.mxu0 %v3483_v43  ;;  %2092 = vmatprep.subr.mxu1 %v3484_v56 }
  0x99   : > { %2041 = vmatpush3.xpose.msra.mxu0 %v3483_v43  ;;  %2093 = vmatpush3.xpose.msra.mxu1 %v3484_v56 }
  0x9a   : > { %2094 = vmatprep.subr.mxu1 %v3485_v59  ;;  %2122 = vmatprep.subr.mxu0 %v3486_v1 }
  0x9c   : > { %2043 = vmatmul.mubr.f32.vlgmr.msra.gmra.mxu0 %v3487_v7 }
  0x9d   : > { %2095 = vmatpush3.xpose.msra.mxu1 %v3485_v59  ;;  %2123 = vmatpush3.xpose.msra.mxu0 %v3486_v1 }
  0x9e   : > { %2045 = vmatprep.mubr.f32.mxu0 %v3488_v32  ;;  %2096 = vmatprep.subr.mxu1 %v3489_v45 }
  0x9f   : > { %2124 = vmatprep.subr.mxu0 %v3490_v57 }
  0xa0   : > { %2046 = vmatmul.mubr.f32.gmra.mxu0 %v3491_v24 }
  0xa1   : > { %2097 = vmatpush3.xpose.msra.mxu1 %v3489_v45  ;;  %2125 = vmatpush3.xpose.msra.mxu0 %v3490_v57 }
  0xa2   : > { %2048 = vmatprep.mubr.f32.mxu0 %v3492_v41  ;;  %2126 = vmatprep.subr.mxu0 %v3493_v0 }
  0xa3   : > { %2178 = vmatprep.subr.mxu1 %v2533_v8 }
  0xa4   : > { %2049 = vmatmul.mubr.f32.gmra.mxu0 %v3494_v23  ;;  %2099 = vmatmul.mubr.f32.vlgmr.msra.gmra.mxu1 %v3495_v63 }
  0xa5   : > { %2127 = vmatpush3.xpose.msra.mxu0 %v3493_v0  ;;  %2179 = vmatpush3.xpose.msra.mxu1 %v2533_v8  ;;  %v3499_v8 = vand.u32 4294901760, %v3492_v41 }
  0xa6   : > { %2051 = vmatprep.mubr.f32.mxu0 %v2826_v4  ;;  %2101 = vmatprep.mubr.f32.mxu1 %v3496_v48 }
  0xa7   : > { %2128 = vmatprep.subr.mxu0 %v3497_v55  ;;  %2180 = vmatprep.subr.mxu1 %v2535_v9 }
  0xa8   : > { %2052 = vmatmul.mubr.f32.gmra.mxu0 %v2836_v6  ;;  %2102 = vmatmul.mubr.f32.gmra.mxu1 %v3498_v42  ;;  %v3508_v6 = vand.u32 4294901760, %v2886_v38 }
  0xa9   : > { %2129 = vmatpush3.xpose.msra.mxu0 %v3497_v55  ;;  %2181 = vmatpush3.xpose.msra.mxu1 %v2535_v9  ;;  %v3502_v9 = vand.u32 4294901760, %v2826_v4  ;;  %v3506_v4 = vand.u32 4294901760, %v2863_v39 }
  0xaa   : > { %2054 = vmatprep.mubr.f32.mxu0 %v2853_v54  ;;  %2104 = vmatprep.mubr.f32.mxu1 %v3499_v8  ;;  %v3510_v54 = vld [vmem:[#allocation12_spill] sm:$0xff] }
  0xab   : > { %2130 = vmatprep.subr.mxu0 %v3500_v29  ;;  %2182 = vmatprep.subr.mxu1 %v2537_v10 }
  0xac   : > { %2055 = vmatmul.mubr.f32.gmra.mxu0 %v2863_v39  ;;  %2105 = vmatmul.mubr.f32.gmra.mxu1 %v3501_v17  ;;  %v3514_v39 = vld [vmem:[#allocation20_spill] sm:$0xff] }
  0xad   : > { %2131 = vmatpush3.xpose.msra.mxu0 %v3500_v29  ;;  %2183 = vmatpush3.xpose.msra.mxu1 %v2537_v10  ;;  %v3505_v10 = vld [vmem:[#allocation11_spill] sm:$0xff] }
  0xae   : > { %2057 = vmatprep.mubr.f32.mxu0 %v2880_v15  ;;  %2107 = vmatprep.mubr.f32.mxu1 %v3502_v9 }
  0xaf   : > { %2132 = vmatprep.subr.mxu0 %v3503_v60  ;;  %2184 = vmatprep.subr.mxu1 %v2541_v13 }
  0xb0   : > { %2058 = vmatmul.mubr.f32.gmra.mxu0 %v2886_v38  ;;  %2108 = vmatmul.mubr.f32.gmra.mxu1 %v3504_v36  ;;  %v3512_v38 = vld [vmem:[#allocation16_spill] sm:$0xff] }
  0xb1   : > { %2133 = vmatpush3.xpose.msra.mxu0 %v3503_v60  ;;  %2185 = vmatpush3.xpose.msra.mxu1 %v2541_v13  ;;  %v3507_v13 = vld [vmem:[#allocation13_spill] sm:$0xff] }
  0xb2   : > { %2060 = vmatprep.mubr.f32.mxu0 %v2899_v31  ;;  %2110 = vmatprep.mubr.f32.mxu1 %v406_v52 }
  0xb3   : > { %2134 = vmatprep.subr.mxu0 %v3505_v10  ;;  %2186 = vmatprep.subr.mxu1 %v2555_v18 }
  0xb4   : > { %2061 = vmatmul.mubr.f32.gmra.mxu0 %v2909_v3  ;;  %2111 = vmatmul.mubr.f32.gmra.mxu1 %v3506_v4 }
  0xb5   : > { %2135 = vmatpush3.xpose.msra.mxu0 %v3505_v10  ;;  %2187 = vmatpush3.xpose.msra.mxu1 %v2555_v18  ;;  %v3509_v18 = vld [vmem:[#allocation14_spill] sm:$0xff] }
  0xb6   : > { %2063 = vmatprep.mubr.f32.mxu0 %v2924_v33  ;;  %2113 = vmatprep.mubr.f32.mxu1 %v426_v40 }
  0xb7   : > { %2136 = vmatprep.subr.mxu0 %v3507_v13  ;;  %2188 = vmatprep.subr.mxu1 %v2577_v27 }
  0xb8   : > { %2064 = vmatmul.mubr.f32.gmra.mxu0 %v2933_v21  ;;  %2114 = vmatmul.mubr.f32.gmra.mxu1 %v3508_v6 }
  0xb9   : > { %2137 = vmatpush3.xpose.msra.mxu0 %v3507_v13  ;;  %2189 = vmatpush3.xpose.msra.mxu1 %v2577_v27  ;;  %v3511_v27 = vld [vmem:[#allocation15_spill] sm:$0xff] }
  0xba   : > { %2116 = vmatprep.mubr.f32.mxu1 %v446_v28  ;;  %2138 = vmatprep.subr.mxu0 %v3509_v18 }
  0xbb   : > { %2190 = vmatprep.subr.mxu1 %v2592_v35  ;;  %2154 = vmatprep.mubr.f32.mxu0 %v3510_v54 }
  0xbc   : > { %2117 = vmatmul.mubr.f32.gmra.mxu1 %v456_v2 }
  0xbd   : > { %2139 = vmatpush3.xpose.msra.mxu0 %v3509_v18  ;;  %2191 = vmatpush3.xpose.msra.mxu1 %v2592_v35  ;;  %v3513_v35 = vld [vmem:[#allocation18_spill] sm:$0xff] }
  0xbe   : > { %2119 = vmatprep.mubr.f32.mxu1 %v466_v16  ;;  %2140 = vmatprep.subr.mxu0 %v3511_v27 }
  0xbf   : > { %2192 = vmatprep.subr.mxu1 %v2620_v46 }
  0xc0   : > { %2120 = vmatmul.mubr.f32.gmra.mxu1 %v476_v62 }
  0xc1   : > { %2141 = vmatpush3.xpose.msra.mxu0 %v3511_v27  ;;  %2193 = vmatpush3.xpose.msra.mxu1 %v2620_v46  ;;  %v3515_v46 = vld [vmem:[#allocation22_spill] sm:$0xff] }
  0xc2   : > { %2142 = vmatprep.subr.mxu0 %v3512_v38  ;;  %2194 = vmatprep.subr.mxu1 %v2628_v51 }
  0xc3   : > { %2210 = vmatprep.mubr.f32.mxu1 %v3510_v54 }
  0xc5   : > { %2143 = vmatpush3.xpose.msra.mxu0 %v3512_v38  ;;  %2195 = vmatpush3.xpose.msra.mxu1 %v2628_v51  ;;  %v3516_v51 = vld [vmem:[#allocation24_spill] sm:$0xff] }
  0xc6   : > { %2144 = vmatprep.subr.mxu0 %v3513_v35  ;;  %2196 = vmatprep.subr.mxu1 %v2647_v61 }
  0xc9   : > { %2145 = vmatpush3.xpose.msra.mxu0 %v3513_v35  ;;  %2197 = vmatpush3.xpose.msra.mxu1 %v2647_v61  ;;  %v3517_v61 = vld [vmem:[#allocation28_spill] sm:$0xff] }
  0xca   : > { %2146 = vmatprep.subr.mxu0 %v3514_v39  ;;  %2198 = vmatprep.subr.mxu1 %v2665_v5 }
  0xcd   : > { %2147 = vmatpush3.xpose.msra.mxu0 %v3514_v39  ;;  %2199 = vmatpush3.xpose.msra.mxu1 %v2665_v5 }
  0xce   : > { %2148 = vmatprep.subr.mxu0 %v3515_v46  ;;  %2200 = vmatprep.subr.mxu1 %v2679_v25 }
  0xd1   : > { %2149 = vmatpush3.xpose.msra.mxu0 %v3515_v46  ;;  %2201 = vmatpush3.xpose.msra.mxu1 %v2679_v25 }
  0xd2   : > { %2150 = vmatprep.subr.mxu0 %v3516_v51  ;;  %2202 = vmatprep.subr.mxu1 %v2693_v37 }
  0xd5   : > { %2151 = vmatpush3.xpose.msra.mxu0 %v3516_v51  ;;  %2203 = vmatpush3.xpose.msra.mxu1 %v2693_v37 }
  0xd6   : > { %2152 = vmatprep.subr.mxu0 %v3517_v61  ;;  %2204 = vmatprep.subr.mxu1 %v3484_v56 }
  0xd9   : > { %2153 = vmatpush3.xpose.msra.mxu0 %v3517_v61  ;;  %2205 = vmatpush3.xpose.msra.mxu1 %v3484_v56 }
  0xda   : > { %2206 = vmatprep.subr.mxu1 %v3485_v59 }
  0xdc   : > { %2155 = vmatmul.mubr.f32.vlgmr.msra.gmra.mxu0 %v2741_v30 }
  0xdd   : > { %2207 = vmatpush3.xpose.msra.mxu1 %v3485_v59  ;;  %2157 = vmatprep.mubr.f32.mxu0 %v2759_v53 }
  0xde   : > { %2208 = vmatprep.subr.mxu1 %v3489_v45 }
  0xe0   : > { %2158 = vmatmul.mubr.f32.gmra.mxu0 %v2765_v26 }
  0xe1   : > { %2209 = vmatpush3.xpose.msra.mxu1 %v3489_v45  ;;  %2160 = vmatprep.mubr.f32.mxu0 %v2780_v50 }
  0xe4   : > { %2161 = vmatmul.mubr.f32.gmra.mxu0 %v2785_v11  ;;  %2211 = vmatmul.mubr.f32.vlgmr.msra.gmra.mxu1 %v2741_v30 }
  0xe5   : > { %2163 = vmatprep.mubr.f32.mxu0 %v2804_v14  ;;  %2213 = vmatprep.mubr.f32.mxu1 %v2759_v53 }
  0xe8   : > { %2164 = vmatmul.mubr.f32.gmra.mxu0 %v2811_v19  ;;  %2214 = vmatmul.mubr.f32.gmra.mxu1 %v2765_v26 }
  0xe9   : > { %2166 = vmatprep.mubr.f32.mxu0 %v2828_v49  ;;  %2216 = vmatprep.mubr.f32.mxu1 %v2780_v50 }
  0xec   : > { %2167 = vmatmul.mubr.f32.gmra.mxu0 %v2841_v58  ;;  %2217 = vmatmul.mubr.f32.gmra.mxu1 %v2785_v11 }
  0xed   : > { %2169 = vmatprep.mubr.f32.mxu0 %v2860_v44  ;;  %2219 = vmatprep.mubr.f32.mxu1 %v2804_v14 }
  0xf0   : > { %2170 = vmatmul.mubr.f32.gmra.mxu0 %v2865_v47  ;;  %2220 = vmatmul.mubr.f32.gmra.mxu1 %v2811_v19 }
  0xf1   : > { %2172 = vmatprep.mubr.f32.mxu0 %v2882_v22  ;;  %2222 = vmatprep.mubr.f32.mxu1 %v2828_v49 }
  0xf4   : > { %2173 = vmatmul.mubr.f32.gmra.mxu0 %v2888_v20  ;;  %2223 = vmatmul.mubr.f32.gmra.mxu1 %v2841_v58 }
  0xf5   : > { %2175 = vmatprep.mubr.f32.mxu0 %v2901_v12  ;;  %2225 = vmatprep.mubr.f32.mxu1 %v2860_v44 }
  0xf8   : > { %2176 = vmatmul.mubr.f32.gmra.mxu0 %v2912_v34  ;;  %2226 = vmatmul.mubr.f32.gmra.mxu1 %v2865_v47 }
  0xf9   : > { %2228 = vmatprep.mubr.f32.mxu1 %v2882_v22 }
  0xfc   : > { %2229 = vmatmul.mubr.f32.gmra.mxu1 %v2888_v20 }
  0xfd   : > { %2231 = vmatprep.mubr.f32.mxu1 %v2901_v12 }
 0x100   : > { %2232 = vmatmul.mubr.f32.gmra.mxu1 %v2912_v34 }
 0x11c   : > { %v3159_v5 = vpop.f32.mrf.mxu0 }
 0x11e   : > { %v3161_v14 = vpop.f32.mrf.mxu0 }
 0x120   : > { %v3163_v25 = vpop.f32.mrf.mxu0 }
 0x122   : > { %v3165_v44 = vpop.f32.mrf.mxu0 }
 0x124   : > { %v1988_v37 = vpop.f32.mrf.mxu1  ;;  %v3167_v30 = vpop.f32.mrf.mxu0 }
 0x125   : > { %v638_v61 = vadd.f32 %v1988_v37, %v3159_v5 }
 0x126   : > { %v631_v19 = vpop.f32.mrf.mxu1  ;;  %v3169_v26 = vpop.f32.mrf.mxu0 }
 0x128   : > { %v1991_v53 = vpop.f32.mrf.mxu1  ;;  %v3173_v11 = vpop.f32.mrf.mxu0 }
 0x12a   : > { %v3171_v50 = vpop.f32.mrf.mxu1  ;;  %v3177_v49 = vpop.f32.mrf.mxu0 }
 0x12c   : > { %v3175_v47 = vpop.f32.mrf.mxu1  ;;  %v3181_v52 = vpop.f32.mrf.mxu0 }
 0x12d   : > { %v662_v37 = vadd.f32 %v3175_v47, %v3167_v30 }
 0x12e   : > { %v3179_v58 = vpop.f32.mrf.mxu1  ;;  %v3185_v22 = vpop.f32.mrf.mxu0 }
 0x130   : > { %v3183_v15 = vpop.f32.mrf.mxu1  ;;  %v3189_v40 = vpop.f32.mrf.mxu0 }
 0x132   : > { %v3187_v20 = vpop.f32.mrf.mxu1  ;;  %v3193_v12 = vpop.f32.mrf.mxu0 }
 0x134   : > { %v3191_v31 = vpop.f32.mrf.mxu1  ;;  %v3197_v3 = vpop.f32.mrf.mxu0 }
 0x136   : > { %v3195_v62 = vpop.f32.mrf.mxu1  ;;  %v3201_v28 = vpop.f32.mrf.mxu0 }
 0x138   : > { %v3199_v34 = vpop.f32.mrf.mxu1  ;;  %v3205_v2 = vpop.f32.mrf.mxu0 }
 0x13a   : > { %v3203_v33 = vpop.f32.mrf.mxu1  ;;  %v3209_v16 = vpop.f32.mrf.mxu0 }
 0x13b   : > { %3518 = vst [vmem:[#allocation25_spill] sm:$0xff] %v3209_v16 }
 0x13c   : > { %v3207_v21 = vpop.f32.mrf.mxu1 }
 0x13e   : > { %v3211_v43 = vpop.f32.mrf.mxu1 }
 0x140   : > { %v3213_v59 = vpop.f32.mrf.mxu1 }
 0x142   : > { %v3215_v7 = vpop.f32.mrf.mxu1 }
 0x143   : > { %3519 = vst [vmem:[#allocation17_spill] sm:$0xff] %v3215_v7 }
 0x15c   : > { %v2044_v56 = vpop.f32.mrf.mxu0 }
 0x15d   : > { %v833_v16 = vadd.f32 %v2044_v56, %v638_v61 }
 0x15e   : > { %v825_v1 = vpop.f32.mrf.mxu0 }
 0x160   : > { %v2047_v32 = vpop.f32.mrf.mxu0 }
 0x162   : > { %v839_v57 = vpop.f32.mrf.mxu0 }
 0x164   : > { %v2100_v45 = vpop.f32.mrf.mxu1  ;;  %v2050_v41 = vpop.f32.mrf.mxu0 }
 0x166   : > { %v1019_v24 = vpop.f32.mrf.mxu1  ;;  %v853_v23 = vpop.f32.mrf.mxu0 }
 0x168   : > { %v2103_v0 = vpop.f32.mrf.mxu1  ;;  %v2053_v48 = vpop.f32.mrf.mxu0 }
 0x16a   : > { %v1035_v63 = vpop.f32.mrf.mxu1  ;;  %v3217_v42 = vpop.f32.mrf.mxu0 }
 0x16c   : > { %v2106_v55 = vpop.f32.mrf.mxu1  ;;  %v3219_v29 = vpop.f32.mrf.mxu0 }
 0x16e   : > { %v1051_v8 = vpop.f32.mrf.mxu1  ;;  %v3223_v9 = vpop.f32.mrf.mxu0 }
 0x170   : > { %v3221_v17 = vpop.f32.mrf.mxu1  ;;  %v3227_v36 = vpop.f32.mrf.mxu0 }
 0x171   : > { %3520 = vst [vmem:[#allocation19_spill] sm:$0xff] %v3227_v36 }
 0x172   : > { %v3225_v60 = vpop.f32.mrf.mxu1  ;;  %v3231_v4 = vpop.f32.mrf.mxu0 }
 0x173   : > { %3521 = vst [vmem:[#allocation5_spill] sm:$0xff] %v3231_v4 }
 0x174   : > { %v3229_v10 = vpop.f32.mrf.mxu1  ;;  %v3235_v6 = vpop.f32.mrf.mxu0 }
 0x175   : > { %3523 = vst [vmem:[#allocation26_spill] sm:$0xff] %v3235_v6 }
 0x176   : > { %v3233_v13 = vpop.f32.mrf.mxu1  ;;  %v3239_v54 = vpop.f32.mrf.mxu0 }
 0x177   : > { %3522 = vst [vmem:[#allocation23_spill] sm:$0xff] %v3233_v13  ;;  %3525 = vst [vmem:[#allocation6_spill] sm:$0xff] %v3239_v54 }
 0x178   : > { %v3237_v18 = vpop.f32.mrf.mxu1  ;;  %v3243_v38 = vpop.f32.mrf.mxu0 }
 0x179   : > { %3524 = vst [vmem:[#allocation21_spill] sm:$0xff] %v3237_v18  ;;  %3527 = vst [vmem:[#allocation29_spill] sm:$0xff] %v3243_v38  ;;  %v632_v18 = vadd.f32 %v631_v19, %v3161_v14  ;;  %v1028_v38 = vadd.f32 %v2100_v45, %v833_v16  ;;  %v861_v16 = vadd.f32 %v2050_v41, %v662_v37 }
 0x17a   : > { %v3241_v27 = vpop.f32.mrf.mxu1  ;;  %v3247_v39 = vpop.f32.mrf.mxu0 }
 0x17b   : > { %3526 = vst [vmem:[#allocation27_spill] sm:$0xff] %v3241_v27  ;;  %3529 = vst [vmem:[#allocation30_spill] sm:$0xff] %v3247_v39  ;;  %v650_v27 = vadd.f32 %v1991_v53, %v3163_v25  ;;  %v826_v4 = vadd.f32 %v825_v1, %v632_v18  ;;  %v656_v53 = vadd.f32 %v3179_v58, %v3169_v26 }
 0x17c   : > { %v3245_v35 = vpop.f32.mrf.mxu1  ;;  %v1060_v47 = vadd.f32 %v2106_v55, %v861_v16  ;;  %v668_v26 = vadd.f32 %v3187_v20, %v3177_v49 }
 0x17d   : > { %3528 = vst [vmem:[#allocation7_spill] sm:$0xff] %v3245_v35  ;;  %v847_v39 = vadd.f32 %v2047_v32, %v650_v27  ;;  %v1020_v36 = vadd.f32 %v1019_v24, %v826_v4  ;;  %v674_v24 = vadd.f32 %v3183_v15, %v3173_v11  ;;  %v854_v30 = vadd.f32 %v853_v23, %v656_v53 }
 0x17e   : > { %v3249_v46 = vpop.f32.mrf.mxu1  ;;  %v686_v11 = vadd.f32 %v3191_v31, %v3181_v52  ;;  %v868_v15 = vadd.f32 %v3217_v42, %v668_v26  ;;  %v680_v42 = vadd.f32 %v3195_v62, %v3185_v22 }
 0x17f   : > { %3530 = vst [vmem:[#allocation8_spill] sm:$0xff] %v3249_v46  ;;  %v644_v46 = vadd.f32 %v3171_v50, %v3165_v44  ;;  %v1044_v56 = vadd.f32 %v2103_v0, %v847_v39  ;;  %v875_v58 = vadd.f32 %v2053_v48, %v674_v24  ;;  %v1052_v41 = vadd.f32 %v1051_v8, %v854_v30  ;;  %v3535_v30 = vld [vmem:[#allocation25_spill] sm:$0xff] }
 0x180   : > { %v3252_v7 = vpop.f32.mrf.mxu1  ;;  %v889_v48 = vadd.f32 %v3219_v29, %v686_v11  ;;  %v882_v22 = vadd.f32 %v3223_v9, %v680_v42  ;;  %v3534_v9 = vld [vmem:[#allocation5_spill] sm:$0xff] }
 0x181   : > { %3531 = vst [vmem:[#allocation9_spill] sm:$0xff] %v3252_v7  ;;  %v840_v19 = vadd.f32 %v839_v57, %v644_v46  ;;  %v1076_v23 = vadd.f32 %v3221_v17, %v875_v58 }
 0x182   : > { %v3256_v13 = vpop.f32.mrf.mxu1  ;;  %v1092_v17 = vadd.f32 %v3229_v10, %v889_v48  ;;  %v3542_v48 = vld [vmem:[#allocation29_spill] sm:$0xff] }
 0x183   : > { %v1036_v18 = vadd.f32 %v1035_v63, %v840_v19 }
 0x19c   : > { %v2156_v51 = vpop.f32.mrf.mxu0 }
 0x19d   : > { %v1265_v5 = vadd.f32 %v2156_v51, %v1028_v38 }
 0x19e   : > { %v1258_v6 = vpop.f32.mrf.mxu0 }
 0x19f   : > { %v1259_v61 = vadd.f32 %v1258_v6, %v1020_v36 }
 0x1a0   : > { %v2159_v54 = vpop.f32.mrf.mxu0 }
 0x1a1   : > { %v1277_v44 = vadd.f32 %v2159_v54, %v1044_v56 }
 0x1a2   : > { %v1270_v35 = vpop.f32.mrf.mxu0 }
 0x1a3   : > { %v1271_v0 = vadd.f32 %v1270_v35, %v1036_v18 }
 0x1a4   : > { %v2162_v7 = vpop.f32.mrf.mxu0  ;;  %v2212_v14 = vpop.f32.mrf.mxu1 }
 0x1a5   : > { %v1442_v25 = vadd.f32 %v2212_v14, %v1265_v5  ;;  %v1289_v27 = vadd.f32 %v2162_v7, %v1060_v47  ;;  %v1068_v7 = vadd.f32 %v3225_v60, %v868_v15  ;;  %v698_v60 = vadd.f32 %v3199_v34, %v3189_v40  ;;  %v3537_v47 = vld [vmem:[#allocation26_spill] sm:$0xff] }
 0x1a6   : > { %v1282_v1 = vpop.f32.mrf.mxu0  ;;  %v1435_v45 = vpop.f32.mrf.mxu1  ;;  %v722_v40 = vadd.f32 %v3213_v59, %v3205_v2  ;;  %v3538_v59 = vld [vmem:[#allocation21_spill] sm:$0xff] }
 0x1a7   : > { %v1530_v50 = vmul.f32 0.5, %v1442_v25  ;;  %v1436_v32 = vadd.f32 %v1435_v45, %v1259_v61  ;;  %v1283_v46 = vadd.f32 %v1282_v1, %v1052_v41  ;;  %v692_v61 = vadd.f32 %v3203_v33, %v3193_v12  ;;  %v3532_v12 = vld [vmem:[#allocation19_spill] sm:$0xff] }
 0x1a8   : > { %v2165_v4 = vpop.f32.mrf.mxu0  ;;  %v2215_v57 = vpop.f32.mrf.mxu1  ;;  %v710_v25 = vadd.f32 %v3207_v21, %v3197_v3  ;;  %v704_v45 = vadd.f32 %v3211_v43, %v3201_v28  ;;  %v903_v34 = vadd.f32 %v3532_v12, %v698_v60  ;;  %v3533_v33 = vld [vmem:[#allocation23_spill] sm:$0xff]  ;;  %v3536_v28 = vld [vmem:[#allocation17_spill] sm:$0xff] }
 0x1a9   : > { %2308 = vtanh.f32 %v1530_v50  ;;  %v1529_v36 = vmul.f32 0.5, %v1436_v32  ;;  %v1454_v6 = vadd.f32 %v2215_v57, %v1277_v44  ;;  %v1301_v5 = vadd.f32 %v2165_v4, %v1076_v23  ;;  %v3545_v60 = vld [vmem:[#allocation9_spill] sm:$0xff] }
 0x1aa   : > { %v1294_v63 = vpop.f32.mrf.mxu0  ;;  %v1447_v54 = vpop.f32.mrf.mxu1  ;;  %v1084_v3 = vadd.f32 %v3533_v33, %v882_v22  ;;  %v896_v44 = vadd.f32 %v3534_v9, %v692_v61  ;;  %v716_v43 = vadd.f32 %v3536_v28, %v3535_v30  ;;  %v917_v2 = vadd.f32 %v3537_v47, %v710_v25 }
 0x1ab   : > { %2310 = vtanh.f32 %v1529_v36  ;;  %v1532_v38 = vmul.f32 0.5, %v1454_v6  ;;  %v1448_v39 = vadd.f32 %v1447_v54, %v1271_v0  ;;  %v1295_v19 = vadd.f32 %v1294_v63, %v1068_v7  ;;  %v3539_v6 = vld [vmem:[#allocation27_spill] sm:$0xff]  ;;  %v3540_v54 = vld [vmem:[#allocation6_spill] sm:$0xff] }
 0x1ac   : > { %v2168_v55 = vpop.f32.mrf.mxu0  ;;  %v2218_v35 = vpop.f32.mrf.mxu1  ;;  %v1108_v4 = vadd.f32 %v3538_v59, %v903_v34  ;;  %v1100_v26 = vadd.f32 %v3539_v6, %v896_v44  ;;  %v931_v7 = vadd.f32 %v3542_v48, %v722_v40 }
 0x1ad   : > { %2312 = vtanh.f32 %v1532_v38  ;;  %v1531_v49 = vmul.f32 0.5, %v1448_v39  ;;  %v1466_v20 = vadd.f32 %v2218_v35, %v1289_v27  ;;  %v1313_v53 = vadd.f32 %v2168_v55, %v1092_v17  ;;  %v3541_v38 = vld [vmem:[#allocation7_spill] sm:$0xff] }
 0x1ae   : > { %v1306_v8 = vpop.f32.mrf.mxu0  ;;  %v1459_v51 = vpop.f32.mrf.mxu1  ;;  %v910_v27 = vadd.f32 %v3540_v54, %v704_v45  ;;  %v1124_v39 = vadd.f32 %v3541_v38, %v917_v2  ;;  %v1140_v61 = vadd.f32 %v3545_v60, %v931_v7 }
 0x1af   : > { %2314 = vtanh.f32 %v1531_v49  ;;  %v1534_v52 = vmul.f32 0.5, %v1466_v20  ;;  %v1460_v31 = vadd.f32 %v1459_v51, %v1283_v46  ;;  %v1307_v57 = vadd.f32 %v1306_v8, %v1084_v3  ;;  %v3543_v8 = vld [vmem:[#allocation30_spill] sm:$0xff] }
 0x1b0   : > { %v2171_v37 = vpop.f32.mrf.mxu0  ;;  %v2221_v14 = vpop.f32.mrf.mxu1  ;;  %v924_v51 = vadd.f32 %v3543_v8, %v716_v43 }
 0x1b1   : > { %2316 = vtanh.f32 %v1534_v52  ;;  %v1533_v56 = vmul.f32 0.5, %v1460_v31  ;;  %v1478_v29 = vadd.f32 %v2221_v14, %v1301_v5  ;;  %v1325_v11 = vadd.f32 %v2171_v37, %v1108_v4 }
 0x1b2   : > { %v1318_v62 = vpop.f32.mrf.mxu0  ;;  %v1471_v10 = vpop.f32.mrf.mxu1  ;;  %v1132_v40 = vadd.f32 %v3256_v13, %v924_v51 }
 0x1b3   : > { %2318 = vtanh.f32 %v1533_v56  ;;  %v1536_v16 = vmul.f32 0.5, %v1478_v29  ;;  %v1472_v1 = vadd.f32 %v1471_v10, %v1295_v19  ;;  %v1319_v46 = vadd.f32 %v1318_v62, %v1100_v26  ;;  %v3544_v56 = vld [vmem:[#allocation8_spill] sm:$0xff] }
 0x1b4   : > { %v2174_v21 = vpop.f32.mrf.mxu0  ;;  %v2224_v18 = vpop.f32.mrf.mxu1  ;;  %v1116_v29 = vadd.f32 %v3544_v56, %v910_v27 }
 0x1b5   : > { %2320 = vtanh.f32 %v1536_v16  ;;  %v1535_v50 = vmul.f32 0.5, %v1472_v1  ;;  %v1490_v32 = vadd.f32 %v2224_v18, %v1313_v53  ;;  %v1337_v37 = vadd.f32 %v2174_v21, %v1124_v39 }
 0x1b6   : > { %v2309_v24 = vpop.eup %2308  ;;  %v1330_v0 = vpop.f32.mrf.mxu0 }
 0x1b7   : > { %v1483_v36 = vpop.f32.mrf.mxu1  ;;  %v1562_v58 = vadd.f32 1.0, %v2309_v24  ;;  %2322 = vtanh.f32 %v1535_v50  ;;  %v1538_v41 = vmul.f32 0.5, %v1490_v32  ;;  %v1331_v12 = vadd.f32 %v1330_v0, %v1116_v29 }
 0x1b8   : > { %v2311_v63 = vpop.eup %2310  ;;  %v1484_v15 = vadd.f32 %v1483_v36, %v1307_v57  ;;  %v2177_v49 = vpop.f32.mrf.mxu0 }
 0x1b9   : > { %v2227_v23 = vpop.f32.mrf.mxu1  ;;  %v1578_v55 = vmul.f32 0.5, %v1562_v58  ;;  %v1561_v35 = vadd.f32 1.0, %v2311_v63  ;;  %2324 = vtanh.f32 %v1538_v41  ;;  %v1349_v34 = vadd.f32 %v2177_v49, %v1140_v61 }
 0x1ba   : > { %v2313_v20 = vpop.eup %2312  ;;  %v1537_v5 = vmul.f32 0.5, %v1484_v15  ;;  %v1502_v52 = vadd.f32 %v2227_v23, %v1325_v11  ;;  %v1342_v53 = vpop.f32.mrf.mxu0 }
 0x1bb   : > { %v1495_v31 = vpop.f32.mrf.mxu1  ;;  %1594 = vst [vmem:[%s3306_s14 + $0x8] sm:$0xff] %v1578_v55  ;;  %v1577_v42 = vmul.f32 0.5, %v1561_v35  ;;  %v1564_v17 = vadd.f32 1.0, %v2313_v20  ;;  %v1343_v44 = vadd.f32 %v1342_v53, %v1132_v40 }
 0x1bc   : > { %v1496_v14 = vadd.f32 %v1495_v31, %v1319_v46  ;;  %v2315_v19 = vpop.eup %2314  ;;  %2326 = vtanh.f32 %v1537_v5  ;;  %v1540_v25 = vmul.f32 0.5, %v1502_v52 }
 0x1bd   : > { %v2230_v22 = vpop.f32.mrf.mxu1  ;;  %1593 = vst [vmem:[%s3306_s14] sm:$0xff] %v1577_v42  ;;  %v1580_v62 = vmul.f32 0.5, %v1564_v17  ;;  %v1563_v10 = vadd.f32 1.0, %v2315_v19 }
 0x1be   : > { %v1539_v16 = vmul.f32 0.5, %v1496_v14  ;;  %v1514_v1 = vadd.f32 %v2230_v22, %v1337_v37  ;;  %v2317_v45 = vpop.eup %2316  ;;  %2328 = vtanh.f32 %v1540_v25 }
 0x1bf   : > { %v1507_v33 = vpop.f32.mrf.mxu1  ;;  %1596 = vst [vmem:[%s3306_s14 + $0x18] sm:$0xff] %v1580_v62  ;;  %v1579_v3 = vmul.f32 0.5, %v1563_v10  ;;  %v1566_v21 = vadd.f32 1.0, %v2317_v45 }
 0x1c0   : > { %2330 = vtanh.f32 %v1539_v16  ;;  %v1542_v18 = vmul.f32 0.5, %v1514_v1  ;;  %v2319_v9 = vpop.eup %2318  ;;  %v1508_v50 = vadd.f32 %v1507_v33, %v1331_v12 }
 0x1c1   : > { %v2233_v32 = vpop.f32.mrf.mxu1  ;;  %1595 = vst [vmem:[%s3306_s14 + $0x10] sm:$0xff] %v1579_v3  ;;  %v1582_v24 = vmul.f32 0.5, %v1566_v21  ;;  %v1565_v30 = vadd.f32 1.0, %v2319_v9 }
 0x1c2   : > { %2332 = vtanh.f32 %v1542_v18  ;;  %v1526_v13 = vadd.f32 %v2233_v32, %v1349_v34  ;;  %v2321_v28 = vpop.eup %2320  ;;  %v1541_v43 = vmul.f32 0.5, %v1508_v50 }
 0x1c3   : > { %v1519_v47 = vpop.f32.mrf.mxu1  ;;  %1598 = vst [vmem:[%s3306_s14 + $0x28] sm:$0xff] %v1582_v24  ;;  %v1581_v2 = vmul.f32 0.5, %v1565_v30  ;;  %v1568_v59 = vadd.f32 1.0, %v2321_v28 }
 0x1c4   : > { %v1544_v4 = vmul.f32 0.5, %v1526_v13  ;;  %v1520_v57 = vadd.f32 %v1519_v47, %v1343_v44  ;;  %v2323_v0 = vpop.eup %2322  ;;  %2334 = vtanh.f32 %v1541_v43 }
 0x1c5   : > { %1597 = vst [vmem:[%s3306_s14 + $0x20] sm:$0xff] %v1581_v2  ;;  %v1584_v36 = vmul.f32 0.5, %v1568_v59  ;;  %v1567_v6 = vadd.f32 1.0, %v2323_v0 }
 0x1c6   : > { %2336 = vtanh.f32 %v1544_v4  ;;  %v1543_v26 = vmul.f32 0.5, %v1520_v57  ;;  %v2325_v58 = vpop.eup %2324 }
 0x1c7   : > { %1600 = vst [vmem:[%s3306_s14 + $0x38] sm:$0xff] %v1584_v36  ;;  %v1583_v41 = vmul.f32 0.5, %v1567_v6  ;;  %v1570_v63 = vadd.f32 1.0, %v2325_v58 }
 0x1c8   : > { %2338 = vtanh.f32 %v1543_v26 }
 0x1c9   : > { %v2327_v54 = vpop.eup %2326  ;;  %1599 = vst [vmem:[%s3306_s14 + $0x30] sm:$0xff] %v1583_v41  ;;  %v1586_v27 = vmul.f32 0.5, %v1570_v63 }
 0x1ca   : > { %v1569_v38 = vadd.f32 1.0, %v2327_v54 }
 0x1cb   : > { %v2329_v39 = vpop.eup %2328  ;;  %1602 = vst [vmem:[%s3306_s14 + $0x48] sm:$0xff] %v1586_v27 }
 0x1cc   : > { %v1585_v15 = vmul.f32 0.5, %v1569_v38  ;;  %v1572_v23 = vadd.f32 1.0, %v2329_v39 }
 0x1cd   : > { %v2331_v11 = vpop.eup %2330 }
 0x1ce   : > { %v1571_v55 = vadd.f32 1.0, %v2331_v11  ;;  %1601 = vst [vmem:[%s3306_s14 + $0x40] sm:$0xff] %v1585_v15  ;;  %v1588_v46 = vmul.f32 0.5, %v1572_v23 }
 0x1cf   : > { %v2333_v35 = vpop.eup %2332 }
 0x1d0   : > { %v1587_v49 = vmul.f32 0.5, %v1571_v55  ;;  %v1574_v20 = vadd.f32 1.0, %v2333_v35  ;;  %1604 = vst [vmem:[%s3306_s14 + $0x58] sm:$0xff] %v1588_v46 }
 0x1d1   : > { %v2335_v48 = vpop.eup %2334 }
 0x1d2   : > { %1603 = vst [vmem:[%s3306_s14 + $0x50] sm:$0xff] %v1587_v49  ;;  %v1590_v7 = vmul.f32 0.5, %v1574_v20  ;;  %v1573_v51 = vadd.f32 1.0, %v2335_v48 }
 0x1d3   : > { %v2337_v8 = vpop.eup %2336 }
 0x1d4   : > { %1606 = vst [vmem:[%s3306_s14 + $0x68] sm:$0xff] %v1590_v7  ;;  %v1576_v5 = vadd.f32 1.0, %v2337_v8  ;;  %v1589_v31 = vmul.f32 0.5, %v1573_v51 }
 0x1d5   : > { %v2339_v52 = vpop.eup %2338 }
 0x1d6   : > { %v1592_v42 = vmul.f32 0.5, %v1576_v5  ;;  %v1575_v17 = vadd.f32 1.0, %v2339_v52  ;;  %1605 = vst [vmem:[%s3306_s14 + $0x60] sm:$0xff] %v1589_v31 }
 0x1d8   : > { %1608 = vst [vmem:[%s3306_s14 + $0x78] sm:$0xff] %v1592_v42  ;;  %v1591_v37 = vmul.f32 0.5, %v1575_v17 }
 0x1da   : > { %1607 = vst [vmem:[%s3306_s14 + $0x70] sm:$0xff] %v1591_v37 }
 0x1db   : > { %2353 = shalt.err (!%p2350_p5)
}
 0x1dc   : > { %s2354_s30 = scalar_lea.hbm %s3330_s23, 2048  ;;  %s2358_s4 = scalar_lea.hbm %s3391_s1, 8192 }
 0x1dd   : > { %p2355_p6 = scmp.ne.s32.totalorder %s3330_s23, %s2354_s30  ;;  %p2359_p10 = scmp.lt.s32.totalorder %s3330_s23, %s3391_s1 }
 0x1de   : > { %p2360_p11 = scmp.lt.s32.totalorder %s2358_s4, %s2354_s30 }
 0x1df   : > { %p2356_p7 = pnand %p2355_p6, %p2499_p3 }
 0x1e0   : > { %p2361_p12 = por %p2360_p11, %p2359_p10 }
 0x1e1   : > { %p2357_p9 = pneg %p2356_p7 }
 0x1e3   : > { %p2362_p13 = pnand %p2361_p12, %p2357_p9 }
 0x1e5   : > { %2365 = shalt.err (!%p2362_p13)
}
 0x1e6   : > { %s2435_s15 = smov 128   ;;  %s2436_s18 = smov 256  }
 0x1e7   : > { %s2437_s21 = smov 8  }
 0x1e8   : > { %2234 = dma.vmem_to_hbm [thread:$0]  (%p2499_p3), %s3333_s10, 2048, %s3330_s23, %s3339_s25, %s2435_s15, %s2436_s18, %s2437_s21  }
 0x1e9 PF: > { %p2240_p0 = scmp.ge.s32.totalorder %s2432_s13, 2  ;;  %s1640_s9 = sand.u32 1, %s2404_s6  }
 0x1ea   : > { %s1641_s22 = scalar_lea.sflag [#allocation3], %s1640_s9 }
 0x1eb   : > { %p2237_p1 = pnand %p2240_p0, %p2508_p8 }
 0x1ed   : > { %p2238_p2 = pneg %p2237_p1 }
 0x1ef   : > { %2399 = dma.done.wait (%p2238_p2), %s1641_s22, 2048  }
 0x1f0   : > { %2401 = vsyncadd (%p2238_p2), %s1641_s22, 4294965248  ;;  %s14_s13 = sadd.s32 1, %s2432_s13   ;;  %s3546_s6 = smov %s2408_s7 }
 0x1f1   : > { %p11_p4 = scmp.ge.s32.totalorder %s14_s13, 6   ;;  %s3547_s7 = smov %s2412_s8 }
 0x1f2   : > { %s3548_s8 = smov %s2517_s24  ;;  %s3549_s9 = smov %s2424_s11 }
 0x1f3   : > { %s3550_s10 = smov %s2428_s12  ;;  %s3551_s11 = smov %s3554_s16 }
 0x1f4   : > { %s3552_s12 = smov %s3558_s17  ;;  %13 = sbr.rel (!%p11_p4) target bundleno = 5 (0x5), region = 58 }
 0x1f9   :  { %1646 = vsyncpa [#allocation3], 1 }
 0x1fa   :  { %1648 = vsyncpa [#allocation3 + $0x1], 1 }

</bundles_post_ra>
